<compile_context>
chip_gen: v6e
topology: v6e:2x2x1
jax: 0.10.0
libtpu: 0.0.40
codegen_flags: <defaults>
</compile_context>

<pallas_src>
import functools
import math

import jax
import jax.numpy as jnp
from jax import lax
from jax.experimental import pallas as pl
from jax.experimental.pallas import tpu as pltpu


def _biattention_kernel(x_ref, m_ref, mask_ref,
                        w_i1_ref, w_m1_ref,
                        w_i2_ref, b_i2_ref,
                        w_m2_ref, b_m2_ref,
                        out_ref, memp_ref,
                        *, inv_scale):
    """One batch element of BiAttention.

    x_ref:    (1, Ld, Din)   context encoding
    m_ref:    (1, Lm, Dm)    query encoding
    mask_ref: (1, 1, Lm)     query mask (float 0/1)
    w_i1_ref: (Din, 1)       input_linear_1 weight (pre-transposed, no bias)
    w_m1_ref: (1, Dm)        memory_linear_1 weight (PyTorch layout)
    w_i2_ref: (Din, H), b_i2_ref: (1, H)   input_linear_2
    w_m2_ref: (Dm,  H), b_m2_ref: (1, H)   memory_linear_2
    out_ref:  (1, Ld, 4H)    concat([x_proj, out1, x_proj*out1, out2*out1])
    memp_ref: (1, Lm, H)     projected memory (second return value)
    """
    x = x_ref[0]            # (Ld, Din)
    m = m_ref[0]            # (Lm, Dm)
    mask = mask_ref[0]      # (1, Lm)

    # ---- attention logits --------------------------------------------------
    # cross_dot = (x @ m^T) / sqrt(Din), contraction expressed without materializing m^T
    cross = lax.dot_general(x, m, (((1,), (1,)), ((), ())),
                            preferred_element_type=jnp.float32) * inv_scale     # (Ld, Lm)
    input_dot = jnp.dot(x, w_i1_ref[...],
                        preferred_element_type=jnp.float32)                     # (Ld, 1)
    memory_dot = lax.dot_general(w_m1_ref[...], m, (((1,), (1,)), ((), ())),
                                 preferred_element_type=jnp.float32)            # (1, Lm)
    att = cross + input_dot + memory_dot - 1e30 * (1.0 - mask)                  # (Ld, Lm)

    # ---- projections (bias folded once) ------------------------------------
    x_proj = jnp.dot(x, w_i2_ref[...],
                     preferred_element_type=jnp.float32) + b_i2_ref[...]        # (Ld, H)
    m_proj = jnp.dot(m, w_m2_ref[...],
                     preferred_element_type=jnp.float32) + b_m2_ref[...]        # (Lm, H)

    # ---- softmax over the memory dimension ---------------------------------
    row_max = jnp.max(att, axis=-1, keepdims=True)                              # (Ld, 1)
    p = jnp.exp(att - row_max)
    w_one = p / jnp.sum(p, axis=-1, keepdims=True)                              # (Ld, Lm)
    out_one = jnp.dot(w_one, m_proj, preferred_element_type=jnp.float32)        # (Ld, H)

    # ---- softmax over the context dimension of per-row maxima --------------
    col = row_max                                                               # == att.max(-1)
    col_max = jnp.max(col, axis=0, keepdims=True)                               # (1, 1)
    e2 = jnp.exp(col - col_max)
    w_two = e2 / jnp.sum(e2, axis=0, keepdims=True)                             # (Ld, 1)
    out_two = jnp.sum(w_two * x_proj, axis=0, keepdims=True)                    # (1, H)

    # ---- lane-dense concatenated output (last dim = 4H) --------------------
    out_ref[0] = jnp.concatenate(
        [x_proj, out_one, x_proj * out_one, out_two * out_one], axis=-1)
    memp_ref[0] = m_proj


def bi_attention_pallas(x, mem, mask, params):
    """x: (N, Ld, Din); mem: (N, Lm, Dm); mask: (N, Lm) float 0/1."""
    N, Ld, Din = x.shape
    _, Lm, Dm = mem.shape
    hid = params["w_i2"].shape[1]
    mask3 = mask.reshape(N, 1, Lm).astype(jnp.float32)

    kernel = functools.partial(_biattention_kernel,
                               inv_scale=1.0 / math.sqrt(Din))

    return pl.pallas_call(
        kernel,
        out_shape=(
            jax.ShapeDtypeStruct((N, Ld, 4 * hid), jnp.float32),
            jax.ShapeDtypeStruct((N, Lm, hid), jnp.float32),
        ),
        grid_spec=pltpu.PrefetchScalarGridSpec(
            num_scalar_prefetch=0,
            grid=(N,),
            in_specs=[
                pl.BlockSpec((1, Ld, Din), lambda b: (b, 0, 0)),   # input
                pl.BlockSpec((1, Lm, Dm), lambda b: (b, 0, 0)),    # memory
                pl.BlockSpec((1, 1, Lm), lambda b: (b, 0, 0)),     # mask
                pl.BlockSpec((Din, 1), lambda b: (0, 0)),          # w_i1
                pl.BlockSpec((1, Dm), lambda b: (0, 0)),           # w_m1
                pl.BlockSpec((Din, hid), lambda b: (0, 0)),        # w_i2
                pl.BlockSpec((1, hid), lambda b: (0, 0)),          # b_i2
                pl.BlockSpec((Dm, hid), lambda b: (0, 0)),         # w_m2
                pl.BlockSpec((1, hid), lambda b: (0, 0)),          # b_m2
            ],
            out_specs=(
                pl.BlockSpec((1, Ld, 4 * hid), lambda b: (b, 0, 0)),
                pl.BlockSpec((1, Lm, hid), lambda b: (b, 0, 0)),
            ),
        ),
        compiler_params=pltpu.CompilerParams(
            dimension_semantics=("parallel",)),
    )(x, mem, mask3,
      params["w_i1"], params["w_m1"],
      params["w_i2"], params["b_i2"],
      params["w_m2"], params["b_m2"])


class BiAttentionPallas:
    """JAX/Pallas port of BiAttention (inference forward pass)."""

    def __init__(self, input_dim, memory_dim, hid_dim, dropout=0.1,
                 key=jax.random.PRNGKey(0)):
        self.dropout = dropout  # inference: identity
        k1, k2, k3, k4, k5, k6 = jax.random.split(key, 6)
        ki = 1.0 / math.sqrt(input_dim)
        km = 1.0 / math.sqrt(memory_dim)
        # Weights stored pre-transposed for (rows @ W) matmuls.
        self.params = {
            "w_i1": jax.random.uniform(k1, (input_dim, 1), jnp.float32, -ki, ki),
            "w_m1": jax.random.uniform(k2, (1, memory_dim), jnp.float32, -km, km),
            "w_i2": jax.random.uniform(k3, (input_dim, hid_dim), jnp.float32, -ki, ki),
            "b_i2": jax.random.uniform(k4, (1, hid_dim), jnp.float32, -ki, ki),
            "w_m2": jax.random.uniform(k5, (memory_dim, hid_dim), jnp.float32, -km, km),
            "b_m2": jax.random.uniform(k6, (1, hid_dim), jnp.float32, -km, km),
        }

    def __call__(self, x, mem, mask):
        return bi_attention_pallas(x, mem, mask, self.params)


def _reference(x, mem, mask, p):
    """Pure-JAX reference matching the PyTorch forward (training=False)."""
    hp = lax.Precision.HIGHEST
    scale = math.sqrt(x.shape[-1])
    input_dot = jnp.einsum("nld,do->nlo", x, p["w_i1"], precision=hp)        # (N,Ld,1)
    memory_dot = jnp.einsum("od,nmd->nom", p["w_m1"], mem, precision=hp)     # (N,1,Lm)
    cross = jnp.einsum("nld,nmd->nlm", x, mem, precision=hp) / scale
    att = cross + input_dot + memory_dot - 1e30 * (1.0 - mask[:, None, :])
    x_proj = jnp.einsum("nld,dh->nlh", x, p["w_i2"], precision=hp) + p["b_i2"]
    m_proj = jnp.einsum("nmd,dh->nmh", mem, p["w_m2"], precision=hp) + p["b_m2"]
    w1 = jax.nn.softmax(att, axis=-1)
    out_one = jnp.einsum("nlm,nmh->nlh", w1, m_proj, precision=hp)
    w2 = jax.nn.softmax(jnp.max(att, axis=-1), axis=-1)                      # (N,Ld)
    out_two = jnp.einsum("nl,nlh->nh", w2, x_proj, precision=hp)[:, None, :]
    out = jnp.concatenate(
        [x_proj, out_one, x_proj * out_one, out_two * out_one], axis=-1)
    return out, m_proj


if __name__ == "__main__":
    key = jax.random.PRNGKey(0)
    bsz, input_len, memory_len = 2, 16, 8
    input_dim = memory_dim = 16   # bmm(input, memory^T) requires matching feature dims
    hid_dim = 32

    k_x, k_m, k_p = jax.random.split(key, 3)
    x = jax.random.normal(k_x, (bsz, input_len, input_dim), jnp.float32)
    mem = jax.random.normal(k_m, (bsz, memory_len, memory_dim), jnp.float32)
    lengths = jnp.array([memory_len, 5], jnp.int32)
    mask = (jnp.arange(memory_len)[None, :] < lengths[:, None]).astype(jnp.float32)

    model = BiAttentionPallas(input_dim, memory_dim, hid_dim, dropout=0.1, key=k_p)
    out, m_proj = model(x, mem, mask)
    out = jax.block_until_ready(out)
    m_proj = jax.block_until_ready(m_proj)

    assert out.shape == (bsz, input_len, 4 * hid_dim), out.shape
    assert m_proj.shape == (bsz, memory_len, hid_dim), m_proj.shape

    ref_out, ref_mproj = _reference(x, mem, mask, model.params)
    assert jnp.allclose(out, ref_out, rtol=1e-2, atol=1e-2)
    assert jnp.allclose(m_proj, ref_mproj, rtol=1e-2, atol=1e-2)

    print("KERNEL_OK")
</pallas_src>

<mosaic_0001>
module attributes {stable_mosaic.version = 11 : i64} {
  func.func @_biattention_kernel(%arg0: i32, %arg1: memref<1x16x16xf32, #tpu.memory_space<vmem>>, %arg2: memref<1x8x16xf32, #tpu.memory_space<vmem>>, %arg3: memref<1x1x8xf32, #tpu.memory_space<vmem>>, %arg4: memref<16x1xf32, #tpu.memory_space<vmem>>, %arg5: memref<1x16xf32, #tpu.memory_space<vmem>>, %arg6: memref<16x32xf32, #tpu.memory_space<vmem>>, %arg7: memref<1x32xf32, #tpu.memory_space<vmem>>, %arg8: memref<16x32xf32, #tpu.memory_space<vmem>>, %arg9: memref<1x32xf32, #tpu.memory_space<vmem>>, %arg10: memref<1x16x128xf32, #tpu.memory_space<vmem>>, %arg11: memref<1x8x32xf32, #tpu.memory_space<vmem>>) attributes {dimension_semantics = [#tpu.dimension_semantics<parallel>], iteration_bounds = array<i64: 2>, scalar_prefetch = 0 : i64, scratch_operands = 0 : i64, tpu.core_type = #tpu.core_type<tc>, window_params = [{transform_indices = @transform_0, window_bounds = array<i64: 1, 16, 16>}, {transform_indices = @transform_1, window_bounds = array<i64: 1, 8, 16>}, {transform_indices = @transform_2, window_bounds = array<i64: 1, 1, 8>}, {pipeline_mode = #tpu.pipeline_mode<synchronous>, transform_indices = @transform_3, window_bounds = array<i64: 16, 1>}, {pipeline_mode = #tpu.pipeline_mode<synchronous>, transform_indices = @transform_4, window_bounds = array<i64: 1, 16>}, {pipeline_mode = #tpu.pipeline_mode<synchronous>, transform_indices = @transform_5, window_bounds = array<i64: 16, 32>}, {pipeline_mode = #tpu.pipeline_mode<synchronous>, transform_indices = @transform_6, window_bounds = array<i64: 1, 32>}, {pipeline_mode = #tpu.pipeline_mode<synchronous>, transform_indices = @transform_7, window_bounds = array<i64: 16, 32>}, {pipeline_mode = #tpu.pipeline_mode<synchronous>, transform_indices = @transform_8, window_bounds = array<i64: 1, 32>}, {transform_indices = @transform_9, window_bounds = array<i64: 1, 16, 128>}, {transform_indices = @transform_10, window_bounds = array<i64: 1, 8, 32>}]} {
    %c0 = arith.constant 0 : index
    %c0_0 = arith.constant 0 : index
    %c0_1 = arith.constant 0 : index
    %0 = vector.load %arg1[%c0, %c0_0, %c0_1] : memref<1x16x16xf32, #tpu.memory_space<vmem>>, vector<1x16x16xf32>
    %1 = vector.shape_cast %0 : vector<1x16x16xf32> to vector<16x16xf32>
    %c0_2 = arith.constant 0 : index
    %c0_3 = arith.constant 0 : index
    %c0_4 = arith.constant 0 : index
    %2 = vector.load %arg2[%c0_2, %c0_3, %c0_4] : memref<1x8x16xf32, #tpu.memory_space<vmem>>, vector<1x8x16xf32>
    %3 = vector.shape_cast %2 : vector<1x8x16xf32> to vector<8x16xf32>
    %c0_5 = arith.constant 0 : index
    %c0_6 = arith.constant 0 : index
    %c0_7 = arith.constant 0 : index
    %4 = vector.load %arg3[%c0_5, %c0_6, %c0_7] : memref<1x1x8xf32, #tpu.memory_space<vmem>>, vector<1x1x8xf32>
    %5 = vector.shape_cast %4 : vector<1x1x8xf32> to vector<1x8xf32>
    %cst = arith.constant dense<0.000000e+00> : vector<16x8xf32>
    %6 = tpu.matmul %1, %3, %cst {dimension_numbers = #tpu.dot_dimension_numbers<[1], [1], [0], [0], [0, 0, 1, 0], [], []>} : vector<16x16xf32>, vector<8x16xf32>, vector<16x8xf32> -> vector<16x8xf32>
    %cst_8 = arith.constant 2.500000e-01 : f32
    %7 = vector.broadcast %cst_8 : f32 to vector<16x8xf32>
    %8 = arith.mulf %6, %7 : vector<16x8xf32>
    %c0_9 = arith.constant 0 : index
    %c0_10 = arith.constant 0 : index
    %9 = vector.load %arg4[%c0_9, %c0_10] : memref<16x1xf32, #tpu.memory_space<vmem>>, vector<16x1xf32>
    %cst_11 = arith.constant dense<0.000000e+00> : vector<16x1xf32>
    %10 = tpu.matmul %1, %9, %cst_11 {dimension_numbers = #tpu.dot_dimension_numbers<[1], [0], [0], [1], [0, 0, 1, 1], [], []>} : vector<16x16xf32>, vector<16x1xf32>, vector<16x1xf32> -> vector<16x1xf32>
    %c0_12 = arith.constant 0 : index
    %c0_13 = arith.constant 0 : index
    %11 = vector.load %arg5[%c0_12, %c0_13] : memref<1x16xf32, #tpu.memory_space<vmem>>, vector<1x16xf32>
    %cst_14 = arith.constant dense<0.000000e+00> : vector<1x8xf32>
    %12 = tpu.matmul %11, %3, %cst_14 {dimension_numbers = #tpu.dot_dimension_numbers<[1], [1], [0], [0], [0, 0, 1, 0], [], []>} : vector<1x16xf32>, vector<8x16xf32>, vector<1x8xf32> -> vector<1x8xf32>
    %13 = vector.broadcast %10 : vector<16x1xf32> to vector<16x8xf32>
    %14 = arith.addf %8, %13 : vector<16x8xf32>
    %15 = vector.broadcast %12 : vector<1x8xf32> to vector<16x8xf32>
    %16 = arith.addf %14, %15 : vector<16x8xf32>
    %cst_15 = arith.constant 1.000000e+00 : f32
    %17 = vector.broadcast %cst_15 : f32 to vector<1x8xf32>
    %18 = arith.subf %17, %5 : vector<1x8xf32>
    %cst_16 = arith.constant 1.000000e+30 : f32
    %19 = vector.broadcast %cst_16 : f32 to vector<1x8xf32>
    %20 = arith.mulf %19, %18 : vector<1x8xf32>
    %21 = vector.broadcast %20 : vector<1x8xf32> to vector<16x8xf32>
    %22 = arith.subf %16, %21 : vector<16x8xf32>
    %c0_17 = arith.constant 0 : index
    %c0_18 = arith.constant 0 : index
    %23 = vector.load %arg6[%c0_17, %c0_18] : memref<16x32xf32, #tpu.memory_space<vmem>>, vector<16x32xf32>
    %cst_19 = arith.constant dense<0.000000e+00> : vector<16x32xf32>
    %24 = tpu.matmul %1, %23, %cst_19 {dimension_numbers = #tpu.dot_dimension_numbers<[1], [0], [0], [1], [0, 0, 1, 1], [], []>} : vector<16x16xf32>, vector<16x32xf32>, vector<16x32xf32> -> vector<16x32xf32>
    %c0_20 = arith.constant 0 : index
    %c0_21 = arith.constant 0 : index
    %25 = vector.load %arg7[%c0_20, %c0_21] : memref<1x32xf32, #tpu.memory_space<vmem>>, vector<1x32xf32>
    %26 = vector.broadcast %25 : vector<1x32xf32> to vector<16x32xf32>
    %27 = arith.addf %24, %26 : vector<16x32xf32>
    %c0_22 = arith.constant 0 : index
    %c0_23 = arith.constant 0 : index
    %28 = vector.load %arg8[%c0_22, %c0_23] : memref<16x32xf32, #tpu.memory_space<vmem>>, vector<16x32xf32>
    %cst_24 = arith.constant dense<0.000000e+00> : vector<8x32xf32>
    %29 = tpu.matmul %3, %28, %cst_24 {dimension_numbers = #tpu.dot_dimension_numbers<[1], [0], [0], [1], [0, 0, 1, 1], [], []>} : vector<8x16xf32>, vector<16x32xf32>, vector<8x32xf32> -> vector<8x32xf32>
    %c0_25 = arith.constant 0 : index
    %c0_26 = arith.constant 0 : index
    %30 = vector.load %arg9[%c0_25, %c0_26] : memref<1x32xf32, #tpu.memory_space<vmem>>, vector<1x32xf32>
    %31 = vector.broadcast %30 : vector<1x32xf32> to vector<8x32xf32>
    %32 = arith.addf %29, %31 : vector<8x32xf32>
    %cst_27 = arith.constant dense<0xFF800000> : vector<16xf32>
    %33 = vector.multi_reduction <maximumf>, %22, %cst_27 [1] : vector<16x8xf32> to vector<16xf32>
    %34 = vector.shape_cast %33 : vector<16xf32> to vector<16x1xf32>
    %35 = vector.broadcast %34 : vector<16x1xf32> to vector<16x8xf32>
    %36 = arith.subf %22, %35 : vector<16x8xf32>
    %37 = math.exp %36 : vector<16x8xf32>
    %cst_28 = arith.constant dense<0.000000e+00> : vector<16xf32>
    %38 = vector.multi_reduction <add>, %37, %cst_28 [1] : vector<16x8xf32> to vector<16xf32>
    %39 = vector.shape_cast %38 : vector<16xf32> to vector<16x1xf32>
    %40 = vector.broadcast %39 : vector<16x1xf32> to vector<16x8xf32>
    %41 = arith.divf %37, %40 : vector<16x8xf32>
    %cst_29 = arith.constant dense<0.000000e+00> : vector<16x32xf32>
    %42 = tpu.matmul %41, %32, %cst_29 {dimension_numbers = #tpu.dot_dimension_numbers<[1], [0], [0], [1], [0, 0, 1, 1], [], []>} : vector<16x8xf32>, vector<8x32xf32>, vector<16x32xf32> -> vector<16x32xf32>
    %cst_30 = arith.constant dense<0xFF800000> : vector<1xf32>
    %43 = vector.multi_reduction <maximumf>, %34, %cst_30 [0] : vector<16x1xf32> to vector<1xf32>
    %44 = vector.shape_cast %43 : vector<1xf32> to vector<1x1xf32>
    %45 = vector.broadcast %44 : vector<1x1xf32> to vector<16x1xf32>
    %46 = arith.subf %34, %45 : vector<16x1xf32>
    %47 = math.exp %46 : vector<16x1xf32>
    %cst_31 = arith.constant dense<0.000000e+00> : vector<1xf32>
    %48 = vector.multi_reduction <add>, %47, %cst_31 [0] : vector<16x1xf32> to vector<1xf32>
    %49 = vector.shape_cast %48 : vector<1xf32> to vector<1x1xf32>
    %50 = vector.broadcast %49 : vector<1x1xf32> to vector<16x1xf32>
    %51 = arith.divf %47, %50 : vector<16x1xf32>
    %52 = vector.broadcast %51 : vector<16x1xf32> to vector<16x32xf32>
    %53 = arith.mulf %52, %27 : vector<16x32xf32>
    %cst_32 = arith.constant dense<0.000000e+00> : vector<32xf32>
    %54 = vector.multi_reduction <add>, %53, %cst_32 [0] : vector<16x32xf32> to vector<32xf32>
    %55 = vector.shape_cast %54 : vector<32xf32> to vector<1x32xf32>
    %56 = arith.mulf %27, %42 : vector<16x32xf32>
    %57 = vector.broadcast %55 : vector<1x32xf32> to vector<16x32xf32>
    %58 = arith.mulf %57, %42 : vector<16x32xf32>
    %59 = tpu.concatenate %27, %42, %56, %58 in 1 : vector<16x32xf32>, vector<16x32xf32>, vector<16x32xf32>, vector<16x32xf32> -> vector<16x128xf32>
    %c0_33 = arith.constant 0 : index
    %c0_34 = arith.constant 0 : index
    %c0_35 = arith.constant 0 : index
    %60 = vector.load %arg10[%c0_33, %c0_34, %c0_35] : memref<1x16x128xf32, #tpu.memory_space<vmem>>, vector<1x16x128xf32>
    %61 = vector.shape_cast %60 : vector<1x16x128xf32> to vector<16x128xf32>
    %62 = vector.shape_cast %59 : vector<16x128xf32> to vector<1x16x128xf32>
    tpu.vector_store %arg10[%c0_33, %c0_34, %c0_35], %62 {strides = array<i32>} : memref<1x16x128xf32, #tpu.memory_space<vmem>>, vector<1x16x128xf32>,
    %c0_36 = arith.constant 0 : index
    %c0_37 = arith.constant 0 : index
    %c0_38 = arith.constant 0 : index
    %63 = vector.load %arg11[%c0_36, %c0_37, %c0_38] : memref<1x8x32xf32, #tpu.memory_space<vmem>>, vector<1x8x32xf32>
    %64 = vector.shape_cast %63 : vector<1x8x32xf32> to vector<8x32xf32>
    %65 = vector.shape_cast %32 : vector<8x32xf32> to vector<1x8x32xf32>
    tpu.vector_store %arg11[%c0_36, %c0_37, %c0_38], %65 {strides = array<i32>} : memref<1x8x32xf32, #tpu.memory_space<vmem>>, vector<1x8x32xf32>,
    return
  }
  func.func @transform_0(%arg0: i32) -> (i32, i32, i32) {
    %c0_i32 = arith.constant 0 : i32
    %c0_i32_0 = arith.constant 0 : i32
    %c0_i32_1 = arith.constant 0 : i32
    return %arg0, %c0_i32, %c0_i32_0 : i32, i32, i32
  }
  func.func @transform_1(%arg0: i32) -> (i32, i32, i32) {
    %c0_i32 = arith.constant 0 : i32
    %c0_i32_0 = arith.constant 0 : i32
    %c0_i32_1 = arith.constant 0 : i32
    return %arg0, %c0_i32, %c0_i32_0 : i32, i32, i32
  }
  func.func @transform_2(%arg0: i32) -> (i32, i32, i32) {
    %c0_i32 = arith.constant 0 : i32
    %c0_i32_0 = arith.constant 0 : i32
    %c0_i32_1 = arith.constant 0 : i32
    return %arg0, %c0_i32, %c0_i32_0 : i32, i32, i32
  }
  func.func @transform_3(%arg0: i32) -> (i32, i32) {
    %c0_i32 = arith.constant 0 : i32
    %c0_i32_0 = arith.constant 0 : i32
    %c0_i32_1 = arith.constant 0 : i32
    return %c0_i32, %c0_i32_0 : i32, i32
  }
  func.func @transform_4(%arg0: i32) -> (i32, i32) {
    %c0_i32 = arith.constant 0 : i32
    %c0_i32_0 = arith.constant 0 : i32
    %c0_i32_1 = arith.constant 0 : i32
    return %c0_i32, %c0_i32_0 : i32, i32
  }
  func.func @transform_5(%arg0: i32) -> (i32, i32) {
    %c0_i32 = arith.constant 0 : i32
    %c0_i32_0 = arith.constant 0 : i32
    %c0_i32_1 = arith.constant 0 : i32
    return %c0_i32, %c0_i32_0 : i32, i32
  }
  func.func @transform_6(%arg0: i32) -> (i32, i32) {
    %c0_i32 = arith.constant 0 : i32
    %c0_i32_0 = arith.constant 0 : i32
    %c0_i32_1 = arith.constant 0 : i32
    return %c0_i32, %c0_i32_0 : i32, i32
  }
  func.func @transform_7(%arg0: i32) -> (i32, i32) {
    %c0_i32 = arith.constant 0 : i32
    %c0_i32_0 = arith.constant 0 : i32
    %c0_i32_1 = arith.constant 0 : i32
    return %c0_i32, %c0_i32_0 : i32, i32
  }
  func.func @transform_8(%arg0: i32) -> (i32, i32) {
    %c0_i32 = arith.constant 0 : i32
    %c0_i32_0 = arith.constant 0 : i32
    %c0_i32_1 = arith.constant 0 : i32
    return %c0_i32, %c0_i32_0 : i32, i32
  }
  func.func @transform_9(%arg0: i32) -> (i32, i32, i32) {
    %c0_i32 = arith.constant 0 : i32
    %c0_i32_0 = arith.constant 0 : i32
    %c0_i32_1 = arith.constant 0 : i32
    return %arg0, %c0_i32, %c0_i32_0 : i32, i32, i32
  }
  func.func @transform_10(%arg0: i32) -> (i32, i32, i32) {
    %c0_i32 = arith.constant 0 : i32
    %c0_i32_0 = arith.constant 0 : i32
    %c0_i32_1 = arith.constant 0 : i32
    return %arg0, %c0_i32, %c0_i32_0 : i32, i32, i32
  }
}

</mosaic_0001>

<bundles_post_ra>
// kernel: tpu_custom_call.1
= control target key start
LH: loop header
LB: loop body
LE: loop exit
PB: predicated region body
PF: predicated region fallthrough
CT: control target
= control target key end

     0   :  { %s1965_s0 = inlined_call_operand.hbm [shape: f32[2,16,16], index: 0, kind: input, shape index: {}]   ;;  %s1966_s1 = inlined_call_operand.vmem [shape: f32[2,8,16], index: 1, kind: input, shape index: {}]   ;;  %s1967_s2 = inlined_call_operand.vmem [shape: f32[2,1,8], index: 2, kind: input, shape index: {}]   ;;  %s1968_s3 = inlined_call_operand.vmem [shape: f32[16,1], index: 3, kind: input, shape index: {}]   ;;  %s1969_s4 = inlined_call_operand.vmem [shape: f32[1,16], index: 4, kind: input, shape index: {}]   ;;  %s1970_s5 = inlined_call_operand.hbm [shape: f32[16,32], index: 5, kind: input, shape index: {}]   ;;  %s1971_s6 = inlined_call_operand.vmem [shape: f32[1,32], index: 6, kind: input, shape index: {}]   ;;  %s1972_s7 = inlined_call_operand.hbm [shape: f32[16,32], index: 7, kind: input, shape index: {}]   ;;  %s1973_s8 = inlined_call_operand.vmem [shape: f32[1,32], index: 8, kind: input, shape index: {}]   ;;  %s1974_s9 = inlined_call_operand.hbm [shape: f32[2,16,128], index: 9, kind: output, shape index: {0}]   ;;  %s1975_s10 = inlined_call_operand.hbm [shape: f32[2,8,32], index: 10, kind: output, shape index: {1}]  }
   0x1   :  { %1985 = sst [smem:[#allocation17_spill]] %s1970_s5 }
   0x2   :  { %1986 = sst [smem:[#allocation18_spill]] %s1972_s7 }
   0x3   :  { %16 = vsyncpa [#allocation3], 0 }
   0x4   :  { %18 = vsyncpa [#allocation3 + $0x1], 0 }
   0x5   :  { %19 = vsyncpa [#allocation6], 0 }
   0x6   :  { %20 = vsyncpa [#allocation4], 0 }
   0x7   :  { %22 = vsyncpa [#allocation4 + $0x1], 0 }
   0x8   :  { %23 = vsyncpa [#allocation10], 0 }
   0x9   :  { %25 = vsyncpa [#allocation10 + $0x1], 0  ;;  %s1677_s13 = smov 0   ;;  %s1679_s14 = smov 0  }
   0xa   :  { %s1681_s15 = smov 0   ;;  %s1683_s16 = smov 0  }
   0xb LB: > { %1987 = sst [smem:[#allocation15_spill]] %s1601_s15  ;;  %s1698_s17 = sadd.s32 4294967295, %s1605_s16   ;;  %s1605_s16 = sphi %s1683_s16, %s2012_s16   ;;  %s1601_s15 = sphi %s1681_s15, %s2009_s15   ;;  %s1597_s14 = sphi %s1679_s14, %s2011_s14   ;;  %s1593_s13 = sphi %s1677_s13, %s2010_s13  }
   0xc   : > { %s1237_s18 = sadd.s32 4294967294, %s1605_s16   ;;  %p51_p0 = scmp.ne.s32.totalorder %s1597_s14, %s1593_s13 }
   0xd   : > { %p1978_p1 = scmp.eq.s32.totalorder %s1698_s17, 0  ;;  %p253_p2 = scmp.eq.s32.totalorder %s1698_s17, 1 }
   0xe   : > { %p259_p3 = scmp.eq.s32.totalorder %s1237_s18, 1  ;;  %p1238_p5 = scmp.ge.s32.totalorder %s1605_s16, 1 }
   0xf   : > { %p1707_p4 = por %p1978_p1, %p51_p0  ;;  %p292_p7 = scmp.lt.s32.totalorder %s1605_s16, 3 }
  0x10   : > { %p1712_p6 = por %p259_p3, %p51_p0  ;;  %s1607_s22 = smov [#allocation5]  }
  0x11   : > { %s1988_s19 = scalar_select %p1707_p4, 1, 0 }
  0x12   : > { %s1989_s20 = scalar_select %p1712_p6, 1, 0 }
  0x13   : > { %p1717_p8 = pnand %p1238_p5, %p292_p7  ;;  %s310_s23 = sshll.u32 %s1607_s22, 4  ;;  %s311_s23 = int_to_ptr.vmem [resolvable:$true] %s310_s23 }
  0x14   : > { %s1608_s25 = smov [#allocation7]   ;;  %s1438_s27 = scalar_lea.vmem %s311_s23, 256 }
  0x15   : > { %s1990_s21 = scalar_select %p1717_p8, 1, 0 }
  0x16   : > { %p1344_p9 = pneg %p1717_p8  ;;  %s326_s26 = sshll.u32 %s1608_s25, 4  ;;  %s327_s26 = int_to_ptr.vmem [resolvable:$true] %s326_s26 }
  0x17   : > { %p1439_p13 = scmp.ne.s32.totalorder %s311_s23, %s1438_s27  ;;  %p1446_p5 = scmp.lt.s32.totalorder %s311_s23, %s311_s23 }
  0x18   : > { %p1726_p11 = pnand %p1344_p9, %p1978_p1  ;;  %p1447_p7 = scmp.lt.s32.totalorder %s1438_s27, %s1438_s27 }
  0x1a   : > { %p1429_p12 = pneg %p1726_p11  ;;  %p1448_p10 = por %p1447_p7, %p1446_p5 }
  0x1c   : > { %p1441_p0 = pnand %p1439_p13, %p1429_p12 }
  0x1e   : > { %p1442_p3 = pneg %p1441_p0 }
  0x20   : > { %p1449_p9 = pnand %p1448_p10, %p1442_p3 }
  0x22   : > { %1452 = shalt.err (!%p1449_p9)
}
  0x23   : > { %s1976_s28 = smov 128   ;;  %s1977_s29 = smov 8  }
  0x24   : > { %s1992_s5 = sld [smem:[#allocation17_spill]]  ;;  %s1464_s12 = scalar_lea.vmem %s327_s26, 256 }
  0x25   : > { %p1465_p13 = scmp.ne.s32.totalorder %s327_s26, %s1464_s12  ;;  %p1472_p10 = scmp.lt.s32.totalorder %s327_s26, %s327_s26 }
  0x26   : > { %p1473_p3 = scmp.lt.s32.totalorder %s1464_s12, %s1464_s12 }
  0x27   : > { %p1467_p0 = pnand %p1465_p13, %p1429_p12 }
  0x28   : > { %p1474_p7 = por %p1473_p3, %p1472_p10 }
  0x29   : > { %p1468_p5 = pneg %p1467_p0 }
  0x2a   : > { %1347 = dma.hbm_to_vmem [thread:$0]  (!%p1726_p11), %s1992_s5, 256, %s311_s23, [#allocation6], %s1976_s28, %s1976_s28, %s1977_s29  }
  0x2b   : > { %p1475_p9 = pnand %p1474_p7, %p1468_p5 }
  0x2d   : > { %1478 = shalt.err (!%p1475_p9)
}
  0x2e   : > { %s1993_s7 = sld [smem:[#allocation18_spill]]  ;;  %s1755_s23 = sadd.s32 1, %s1605_s16  }
  0x2f   : > { %s38_s24 = sadd.s32 1, %s1601_s15  ;;  %s35_s25 = ssub.s32 %s1605_s16, %s1755_s23 }
  0x30   : > { %p45_p12 = scmp.ne.s32.totalorder %s1601_s15, %s1597_s14  ;;  %p36_p13 = scmp.eq.s32.totalorder %s35_s25, 0 }
  0x31   : > { %p46_p0 = scmp.eq.s32.totalorder %s1605_s16, 0  ;;  %p1364_p10 = scmp.lt.s32.totalorder %s1605_s16, 2 }
  0x32   : > { %p1765_p5 = por %p253_p2, %p45_p12  ;;  %s343_s11 = sand.u32 1, %s1601_s15  }
  0x33   : > { %s1771_s30 = scalar_select %p36_p13, %s1601_s15, %s38_s24  }
  0x34   : > { %1350 = dma.hbm_to_vmem [thread:$0]  (!%p1726_p11), %s1993_s7, 256, %s327_s26, [#allocation6], %s1976_s28, %s1976_s28, %s1977_s29  }
  0x35   : > { %s1994_s27 = scalar_select %p1765_p5, 1, 0 }
  0x36   : > { %1995 = sst [smem:[#allocation16_spill]] %s1771_s30  ;;  %p47_p3 = por %p46_p0, %p45_p12 }
  0x37   : > { %s1242_s12 = sshll.u32 %s343_s11, 4  ;;  %s1273_s26 = sshll.u32 %s1605_s16, 8 }
  0x38   : > { %s1778_s28 = scalar_lea.hbm %s1965_s0, %s1273_s26  ;;  %s347_s25 = scalar_lea.vmem [#allocation2], %s1242_s12 }
  0x39   : > { %s354_s29 = sshll.u32 %s347_s25, 4  ;;  %p1782_p2 = pnand %p1364_p10, %p47_p3  ;;  %s1780_s29 = int_to_ptr.vmem [resolvable:$true] %s354_s29 }
  0x3a   : > { %s1786_s24 = scalar_lea.sflag [#allocation3], %s343_s11  ;;  %s1479_s7 = scalar_lea.hbm %s1778_s28, 256 }
  0x3b   : > { %p1480_p11 = scmp.ne.s32.totalorder %s1778_s28, %s1479_s7  ;;  %p1481_p7 = pneg %p1782_p2 }
  0x3c   : > { %s1484_s12 = scalar_lea.hbm %s1965_s0, 512  ;;  %p1485_p13 = scmp.lt.s32.totalorder %s1778_s28, %s1965_s0 }
  0x3d   : > { %p1482_p9 = pnand %p1481_p7, %p1480_p11  ;;  %p1486_p0 = scmp.lt.s32.totalorder %s1484_s12, %s1479_s7 }
  0x3f   : > { %p1483_p12 = pneg %p1482_p9  ;;  %p1487_p10 = por %p1486_p0, %p1485_p13 }
  0x41   : > { %p1488_p3 = pnand %p1487_p10, %p1483_p12 }
  0x43   : > { %1491 = shalt.err (!%p1488_p3)
}
  0x44   : > { %s1492_s11 = scalar_lea.vmem %s1780_s29, 256  ;;  %s1611_s30 = smov [#allocation2]  }
  0x45   : > { %p1493_p1 = scmp.ne.s32.totalorder %s1780_s29, %s1492_s11  ;;  %s1497_s15 = sshll.u32 %s1611_s30, 4  ;;  %s1498_s15 = int_to_ptr.vmem [resolvable:$false] %s1497_s15 }
  0x46   : > { %s1499_s26 = scalar_lea.vmem %s1498_s15, 512  ;;  %p1500_p9 = scmp.lt.s32.totalorder %s1780_s29, %s1498_s15 }
  0x47   : > { %p1495_p6 = pnand %p1493_p1, %p1481_p7  ;;  %p1501_p5 = scmp.lt.s32.totalorder %s1499_s26, %s1492_s11 }
  0x49   : > { %p1496_p11 = pneg %p1495_p6  ;;  %p1502_p4 = por %p1501_p5, %p1500_p9 }
  0x4b   : > { %p1503_p8 = pnand %p1502_p4, %p1496_p11 }
  0x4d   : > { %1506 = shalt.err (!%p1503_p8)
}
  0x4e   : > { %s1997_s7 = smov 8   ;;  %s1998_s18 = smov 128  }
  0x4f   : > { %1354 = dma.hbm_to_vmem [thread:$0]  (!%p1782_p2), %s1778_s28, 256, %s1780_s29, %s1786_s24, %s1998_s18, %s1998_s18, %s1997_s7  }
  0x50   : > { %p1999_p1 = scmp.ne.s32.totalorder %s1990_s21, 0 }
  0x51   : > { %s1813_s30 = sand.u32 (!%p1999_p1), 1, %s1597_s14   ;;  %p2000_p4 = scmp.ne.s32.totalorder (!%p1999_p1), %s1988_s19, 0 }
  0x52   : > { %379 = sbr.rel (%p1999_p1) target bundleno = 1088 (0x440), region = 56  ;;  %s1983_s15 = sshll.u32 (!%p1999_p1), %s1813_s30, 4 }
  0x53   : > { %s382_s12 = scalar_lea.sflag (!%p1999_p1), [#allocation3], %s1813_s30  ;;  %s385_s5 = scalar_lea.vmem (!%p1999_p1), [#allocation2], %s1983_s15 }
  0x57   : > { %1576 = dma.done.wait (%p2000_p4), %s382_s12, 256  }
  0x58   : > { %1578 = vsyncadd (%p2000_p4), %s382_s12, 4294967040  ;;  %p2001_p6 = scmp.eq.s32.totalorder %s1698_s17, 0 }
  0x5a   : > { %1580 = dma.done.wait (%p2001_p6), [#allocation6], 512   ;;  %p2002_p8 = pmov %p2001_p6 }
  0x5b   : > { %p442_p5 = scmp.lt.s32.totalorder %s1698_s17, 1  ;;  %vm453_vm0 = vcmask 130048   ;;  %v541_v0 = vld [vmem:[%s1968_s3 + $0x8] sm:$0xff]  ;;  %v540_v1 = vld [vmem:[%s1968_s3] sm:$0xff]  ;;  %v1612_v5 = vmov 0.0   ;;  %vm1613_vm1 = vmmov 0   ;;  %v703_v18 = vlaneseq }
  0x5c   : > { %1582 = vsyncadd (%p2002_p8), [#allocation6], 4294966784  ;;  %v449_v2 = vld [vmem:[%s385_s5] sm:$0xff]  ;;  %1299 = vmatprep.subr.mxu1 %v541_v0  ;;  %v450_v4 = vld [vmem:[%s385_s5 + $0x8] sm:$0xff]  ;;  %v1614_v7 = vmov 0   ;;  %vm882_vm2 = vcmask 64512  }
  0x5d   : > { %s1829_s21 = scalar_select %p442_p5, %s1698_s17, 1  ;;  %1303 = vmatprep.mubr.msk.f32.mxu1 %vm453_vm0, %v449_v2  ;;  %1300 = vmatpush3.msra.mxu1 %v541_v0  ;;  %v617_v6 = vld [vmem:[%s1969_s4] sm:$0x1]  ;;  %v720_v13 = vld [vmem:[#allocation5 + $0x8] sm:$0xff]  ;;  %v804_v16 = vld [vmem:[#allocation7 + $0x8] sm:$0xff]  ;;  %v704_v20 = vshrl.u32 %v703_v18, 7 }
  0x5e   : > { %1301 = vmatprep.subr.mxu1 %v540_v1  ;;  %1296 = vmatprep.mubr.msk.f32.mxu0 %vm453_vm0, %v449_v2  ;;  %v719_v15 = vld [vmem:[#allocation5] sm:$0xff]  ;;  %v803_v17 = vld [vmem:[#allocation7] sm:$0xff]  ;;  %s1250_s24 = sshll.u32 %s1813_s30, 3  ;;  %vm1011_vm3 = vcmask 261120   ;;  %s1615_s11 = smov 32  }
  0x5f   : > { %s1251_s28 = sshll.u32 %s1829_s21, 3  ;;  %1302 = vmatpush3.msra.mxu1 %v540_v1  ;;  %1412 = vset.pattern.permute.xlu0 %v1614_v7  ;;  %v705_v22 = vsub.s32 0, %v704_v20  ;;  %v1262_v48 = vld [vmem:[%s1973_s8] ss:$0 sm:$0xff]  ;;  %s1984_s26 = smov 96  }
  0x60   : > { %s445_s22 = scalar_lea.vmem %s1966_s1, %s1251_s28  ;;  %1304 = vmatmul.mubr.msk.f32.vlgmr.msra.gmra.mxu1 %vm453_vm0, %v450_v4  ;;  %1311 = vmatprep.subr.mxu1 %v720_v13  ;;  %s448_s28 = scalar_lea.vmem %s1967_s2, %s1829_s21 }
  0x61   : > { %v451_v3 = vld [vmem:[%s445_s22] sm:$0xff]  ;;  %1315 = vmatprep.mubr.msk.f32.mxu1 %vm453_vm0, %v449_v2  ;;  %1312 = vmatpush3.msra.mxu1 %v720_v13  ;;  %s1867_s22 = scalar_lea.vmem [#allocation9], %s1250_s24  ;;  %s1270_s7 = sshll.u32 %s1698_s17, 7 }
  0x62   : > { %1294 = vmatprep.subr.msk.mxu0 %vm453_vm0, %v451_v3  ;;  %1313 = vmatprep.subr.mxu1 %v719_v15  ;;  %v452_v19 = vld [vmem:[%s448_s28] sm:$0x1]  ;;  %s1095_s18 = sshll.u32 %s1867_s22, 4  ;;  %s1617_s12 = smov 64   ;;  %s1096_s18 = int_to_ptr.vmem [resolvable:$true] %s1095_s18 }
  0x63   : > { %1295 = vmatpush3.xpose.msk.msra.mxu0 %vm453_vm0, %v451_v3  ;;  %1314 = vmatpush3.msra.mxu1 %v719_v15  ;;  %v709_v21 = vsub.f32 1.0, %v452_v19  ;;  %s1093_s21 = scalar_lea.hbm %s1975_s10, %s1270_s7  ;;  %s1066_s29 = scalar_lea.sflag [#allocation10], %s1813_s30 }
  0x64   : > { %1306 = vmatprep.subr.mxu0 %v1612_v5  ;;  %1316 = vmatmul.mubr.msk.f32.vlgmr.msra.gmra.mxu1 %vm453_vm0, %v450_v4  ;;  %s1507_s24 = scalar_lea.vmem %s1096_s18, 128  ;;  %p2003_p7 = scmp.ne.s32.totalorder %s1994_s27, 0 }
  0x65   : > { %v710_v23 = vmul.f32 1e+30, %v709_v21  ;;  %p1508_p2 = scmp.ne.s32.totalorder %s1096_s18, %s1507_s24  ;;  %s1618_s19 = smov [#allocation9]  }
  0x66   : > { %1297 = vmatmul.mubr.msk.f32.vlgmr.msra.gmra.mxu0 %vm453_vm0, %v450_v4  ;;  %s1511_s25 = sshll.u32 %s1618_s19, 4  ;;  %s1512_s25 = int_to_ptr.vmem [resolvable:$false] %s1511_s25 }
  0x67   : > { %1307 = vmatpush3.xpose.msk.msra.mxu0 %vm453_vm0, %v451_v3  ;;  %1308 = vmatprep.mubr.msk.f32.mxu0 %vm1613_vm1, %v1612_v5  ;;  %v715_v28 = vrot.slane %v710_v23, %v705_v22  ;;  %p1509_p12 = pnand %p1508_p2, %p2003_p7  ;;  %p1514_p0 = scmp.lt.s32.totalorder %s1096_s18, %s1512_s25 }
  0x68   : > { %1318 = vmatprep.subr.mxu0 %v1612_v5 }
  0x69   : > { %p1510_p13 = pneg %p1509_p12 }
  0x6a   : > { %1309 = vmatmul.mubr.msk.f32.vlgmr.msra.gmra.mxu0 %vm453_vm0, %v617_v6 }
  0x6b   : > { %1322 = vmatprep.mubr.msk.f32.mxu0 %vm1613_vm1, %v1612_v5  ;;  %1319 = vmatpush3.msra.mxu0 %v804_v16  ;;  %v1259_v16 = vld [vmem:[%s1971_s6] ss:$0 sm:$0xff] }
  0x6c   : > { %1320 = vmatprep.subr.mxu0 %v1612_v5 }
  0x6d   : > { %1321 = vmatpush3.msra.mxu0 %v803_v17 }
  0x6e   : > { %1323 = vmatmul.mubr.msk.f32.vlgmr.msra.gmra.mxu0 %vm453_vm0, %v451_v3 }
 0x120   : > { %v1305_v8 = vpop.f32.mrf.mxu1 }
 0x122   : > { %v608_v10 = vpop.f32.mrf.mxu1 }
 0x123   : > { %693 = vperm.xlu0 %1412, %v608_v10  }
 0x126   : > { %v1298_v9 = vpop.f32.mrf.mxu0 }
 0x127   : > { %698 = vperm.xlu0 %1412, %v1305_v8   ;;  %v539_v29 = vmul.f32 0.25, %v1298_v9 }
 0x128   : > { %v529_v11 = vpop.f32.mrf.mxu0 }
 0x129   : > { %v538_v24 = vmul.f32 0.25, %v529_v11 }
 0x12a   : > { %v687_v12 = vpop.f32.mrf.mxu0 }
 0x12b   : > { %v706_v25 = vrot.slane %v687_v12, %v705_v22 }
 0x12c   : > { %v1310_v14 = vpop.f32.mrf.mxu0 }
 0x12d   : > { %v1317_v14 = vpop.f32.mrf.mxu1 }
 0x12e   : > { %v878_v49 = vpop.f32.mrf.mxu0  ;;  %v1876_v18 = vadd.f32 %v1317_v14, %v1259_v16 }
 0x12f   : > { %v879_v50 = vadd.f32 %v1262_v48, %v878_v49  ;;  %v794_v17 = vpop.f32.mrf.mxu1 }
 0x130   : > { %v1324_v51 = vpop.f32.mrf.mxu0  ;;  %v1878_v20 = vadd.f32 %v1259_v16, %v794_v17 }
 0x131   : > { %1325 = vmatprep.subr.mxu1 %v879_v50  ;;  %1059 = vst.msk [vmem:[%s1867_s22] sm:$0xff] %vm1011_vm3, %v879_v50 }
 0x132   : > { %1326 = vmatpush3.msra.mxu1 %v879_v50 }
 0x19e   : > { %v694_v26 = vpop.permute.xlu0 %693 }
 0x19f   : > { %v701_v27 = vadd.f32 %v694_v26, %v538_v24 }
 0x1a1   : > { %v707_v30 = vadd.f32 %v706_v25, %v701_v27 }
 0x1a2   : > { %v699_v31 = vpop.permute.xlu0 %698 }
 0x1a3   : > { %v702_v32 = vadd.f32 %v699_v31, %v539_v29  ;;  %v717_v33 = vsub.f32 %v707_v30, %v715_v28 }
 0x1a5   : > { %v708_v34 = vadd.f32 %v706_v25, %v702_v32  ;;  %v883_v35 = vsel %vm882_vm2, %v717_v33, -inf }
 0x1a6   : > { %884 = vmax.xlane.f32.xlu1 %v883_v35 }
 0x1a7   : > { %v718_v36 = vsub.f32 %v708_v34, %v715_v28 }
 0x1a9   : > { %v886_v37 = vsel %vm882_vm2, %v718_v36, -inf }
 0x1aa   : > { %887 = vmax.xlane.f32.xlu1 %v886_v37 }
 0x22f   : > { %v885_v38 = vpop.xlane.xlu1 %884 }
 0x230   : > { %v889_v39 = vsub.f32 %v717_v33, %v885_v38 }
 0x232   : > { %v891_v40 = vmul.f32 1.442695, %v889_v39 }
 0x233   : > { %v888_v41 = vpop.xlane.xlu1 %887 }
 0x234   : > { %1413 = vpow2.f32 %v891_v40  ;;  %v890_v42 = vsub.f32 %v718_v36, %v888_v41  ;;  %v986_v58 = vmax.f32 %v885_v38, %v888_v41 }
 0x236   : > { %v893_v43 = vmul.f32 1.442695, %v890_v42  ;;  %v987_v59 = vrot.slane %v986_v58, 4 }
 0x238   : > { %1415 = vpow2.f32 %v893_v43  ;;  %v988_v60 = vmax.f32 %v986_v58, %v987_v59 }
 0x23a   : > { %v989_v61 = vrot.slane %v988_v60, 2 }
 0x23c   : > { %v990_v62 = vmax.f32 %v988_v60, %v989_v61 }
 0x23e   : > { %v991_v63 = vrot.slane %v990_v62, 1 }
 0x240   : > { %v992_v0 = vmax.f32 %v990_v62, %v991_v63 }
 0x241   : > { %v1414_v44 = vpop.eup %1413 }
 0x242   : > { %v895_v45 = vsel %vm882_vm2, %v1414_v44, 0.0  ;;  %v993_v1 = vsub.f32 %v885_v38, %v992_v0  ;;  %v994_v2 = vsub.f32 %v888_v41, %v992_v0 }
 0x243   : > { %896 = vadd.xlane.f32.xlu0 %v895_v45 }
 0x244   : > { %v995_v3 = vmul.f32 1.442695, %v993_v1  ;;  %v997_v4 = vmul.f32 1.442695, %v994_v2 }
 0x245   : > { %v1416_v46 = vpop.eup %1415 }
 0x246   : > { %v898_v47 = vsel %vm882_vm2, %v1416_v46, 0.0 }
 0x247   : > { %899 = vadd.xlane.f32.xlu1 %v898_v47 }
 0x2cc   : > { %v897_v52 = vpop.xlane.xlu0 %896 }
 0x2cd   : > { %1417 = vrcp.f32 %v897_v52 }
 0x2d0   : > { %v900_v53 = vpop.xlane.xlu1 %899 }
 0x2d1   : > { %1419 = vrcp.f32 %v900_v53 }
 0x2d2   : > { %1421 = vpow2.f32 %v995_v3 }
 0x2d3   : > { %1423 = vpow2.f32 %v997_v4 }
 0x2da   : > { %v1418_v54 = vpop.eup %1417 }
 0x2db   : > { %v902_v55 = vmul.f32 %v1418_v54, %v1414_v44 }
 0x2dd   : > { %1327 = vmatprep.mubr.msk.f32.mxu1 %vm882_vm2, %v902_v55 }
 0x2de   : > { %v1420_v56 = vpop.eup %1419 }
 0x2df   : > { %v904_v57 = vmul.f32 %v1420_v56, %v1416_v46  ;;  %v1422_v5 = vpop.eup %1421 }
 0x2e0   : > { %v1424_v6 = vpop.eup %1423 }
 0x2e1   : > { %1328 = vmatmul.mubr.msk.f32.vlgmr.msra.gmra.mxu1 %vm882_vm2, %v904_v57  ;;  %v999_v7 = vadd.f32 %v1424_v6, %v1422_v5 }
 0x2e3   : > { %v1000_v8 = vrot.slane %v999_v7, 4 }
 0x2e5   : > { %v1001_v9 = vadd.f32 %v1000_v8, %v999_v7 }
 0x2e7   : > { %v1002_v10 = vrot.slane %v1001_v9, 2 }
 0x2e9   : > { %v1003_v11 = vadd.f32 %v1002_v10, %v1001_v9 }
 0x2eb   : > { %v1004_v12 = vrot.slane %v1003_v11, 1 }
 0x2ed   : > { %v1005_v13 = vadd.f32 %v1004_v12, %v1003_v11 }
 0x2ef   : > { %1425 = vrcp.f32 %v1005_v13 }
 0x2fc   : > { %v1426_v15 = vpop.eup %1425 }
 0x2fd   : > { %v1008_v19 = vmul.f32 %v1426_v15, %v1424_v6  ;;  %v1007_v21 = vmul.f32 %v1426_v15, %v1422_v5 }
 0x2ff   : > { %v1010_v22 = vmul.f32 %v1008_v19, %v1876_v18  ;;  %v1009_v23 = vmul.f32 %v1007_v21, %v1878_v20 }
 0x301   : > { %v1013_v24 = vsel %vm1011_vm3, %v1010_v22, 0.0  ;;  %v1012_v25 = vsel %vm1011_vm3, %v1009_v23, 0.0 }
 0x302   : > { %v1014_v26 = vadd.f32 %v1013_v24, %v1012_v25 }
 0x304   : > { %v1015_v27 = vrot.slane %v1014_v26, 4 }
 0x306   : > { %v1016_v28 = vadd.f32 %v1015_v27, %v1014_v26 }
 0x308   : > { %v1017_v29 = vrot.slane %v1016_v28, 2 }
 0x30a   : > { %v1018_v30 = vadd.f32 %v1017_v29, %v1016_v28 }
 0x30c   : > { %v1019_v31 = vrot.slane %v1018_v30, 1 }
 0x30e   : > { %v1020_v33 = vadd.f32 %v1019_v31, %v1018_v30 }
 0x3a1   : > { %v1329_v32 = vpop.f32.mrf.mxu1 }
 0x3a2   : > { %1029 = vrot.lane.b32.xlu1 %v1329_v32, %s1615_s11  ;;  %v1022_v36 = vmul.f32 %v1329_v32, %v1876_v18 }
 0x3a3   : > { %v977_v34 = vpop.f32.mrf.mxu1 }
 0x3a4   : > { %v1023_v35 = vmul.f32 %v1020_v33, %v977_v34 }
 0x3a6   : > { %1027 = vrot.lane.b32.xlu1 %v977_v34, %s1615_s11  ;;  %1043 = vrot.lane.b32.xlu0 %v1023_v35, %s1984_s26  ;;  %s1513_s11 = scalar_lea.vmem %s1512_s25, 256 }
 0x3a7   : > { %p1515_p10 = scmp.lt.s32.totalorder %s1513_s11, %s1507_s24 }
 0x3a9   : > { %p1516_p3 = por %p1515_p10, %p1514_p0 }
 0x3aa   : > { %1037 = vrot.lane.b32.xlu1 %v1022_v36, %s1617_s12 }
 0x3ab   : > { %p1517_p11 = pnand %p1516_p3, %p1510_p13 }
 0x3ad   : > { %1520 = shalt.err (!%p1517_p11)
}
 0x3ae   : > { %s1521_s22 = scalar_lea.hbm %s1093_s21, 128  ;;  %s1525_s28 = scalar_lea.hbm %s1975_s10, 256 }
 0x3af   : > { %p1522_p9 = scmp.ne.s32.totalorder %s1093_s21, %s1521_s22  ;;  %p1526_p6 = scmp.lt.s32.totalorder %s1093_s21, %s1975_s10 }
 0x3b0   : > { %p1527_p8 = scmp.lt.s32.totalorder %s1525_s28, %s1521_s22 }
 0x3b1   : > { %p1523_p1 = pnand %p1522_p9, %p2003_p7 }
 0x3b2   : > { %p1528_p5 = por %p1527_p8, %p1526_p6 }
 0x3b3   : > { %p1524_p4 = pneg %p1523_p1 }
 0x3b5   : > { %p1529_p2 = pnand %p1528_p5, %p1524_p4 }
 0x3b7   : > { %1532 = shalt.err (!%p1529_p2)
}
 0x3b8   : > { %1341 = dma.vmem_to_hbm [thread:$0]  (%p2003_p7), %s1096_s18, 128, %s1093_s21, %s1066_s29   ;;  %v1021_v37 = vmul.f32 %v977_v34, %v1878_v20  ;;  %v1024_v38 = vmul.f32 %v1329_v32, %v1020_v33  ;;  %vm1054_vm4 = vcmask 785408   ;;  %vm1051_vm5 = vcmask 523264  }
 0x3b9   : > { %s2004_s24 = smov 96   ;;  %s2005_s15 = sshll.u32 %s1813_s30, 4 }
 0x3ba   : > { %1035 = vrot.lane.b32.xlu1 %v1021_v37, %s1617_s12  ;;  %s434_s26 = scalar_lea.vmem [#allocation8], %s2005_s15  ;;  %s1274_s18 = sshll.u32 %s1698_s17, 8 }
 0x3bb   : > { %s1079_s19 = sshll.u32 %s434_s26, 4  ;;  %s1921_s29 = scalar_lea.hbm %s1974_s9, %s1274_s18  ;;  %s1913_s19 = int_to_ptr.vmem [resolvable:$true] %s1079_s19 }
 0x3bc   : > { %s1061_s17 = scalar_lea.sflag [#allocation4], %s1813_s30  ;;  %s1533_s25 = scalar_lea.vmem %s1913_s19, 256 }
 0x3bd   : > { %p1534_p12 = scmp.ne.s32.totalorder %s1913_s19, %s1533_s25  ;;  %s1619_s11 = smov [#allocation8]  }
 0x3be   : > { %1045 = vrot.lane.b32.xlu1 %v1024_v38, %s2004_s24  ;;  %s1537_s22 = sshll.u32 %s1619_s11, 4  ;;  %s1538_s22 = int_to_ptr.vmem [resolvable:$false] %s1537_s22 }
 0x3bf   : > { %p1535_p13 = pnand %p1534_p12, %p2003_p7  ;;  %s1539_s7 = scalar_lea.vmem %s1538_s22, 512 }
 0x3c0   : > { %p1540_p10 = scmp.lt.s32.totalorder %s1913_s19, %s1538_s22  ;;  %p1541_p3 = scmp.lt.s32.totalorder %s1539_s7, %s1533_s25 }
 0x3c1   : > { %p1536_p0 = pneg %p1535_p13 }
 0x3c2   : > { %p1542_p11 = por %p1541_p3, %p1540_p10 }
 0x3c4   : > { %p1543_p9 = pnand %p1542_p11, %p1536_p0 }
 0x414   : > { %v1030_v39 = vpop.permute.xlu1 %1029 }
 0x415   : > { %v1050_v47 = vsel %vm1011_vm3, %v1876_v18, %v1030_v39 }
 0x418   : > { %v1028_v40 = vpop.permute.xlu1 %1027  ;;  %v1044_v44 = vpop.permute.xlu0 %1043 }
 0x419   : > { %v1049_v42 = vsel %vm1011_vm3, %v1878_v20, %v1028_v40 }
 0x41c   : > { %v1038_v41 = vpop.permute.xlu1 %1037 }
 0x41d   : > { %v1053_v48 = vsel %vm1051_vm5, %v1050_v47, %v1038_v41 }
 0x42c   : > { %v1036_v43 = vpop.permute.xlu1 %1035 }
 0x42d   : > { %v1052_v45 = vsel %vm1051_vm5, %v1049_v42, %v1036_v43 }
 0x42e   : > { %v1055_v46 = vsel %vm1054_vm4, %v1052_v45, %v1044_v44 }
 0x42f   : > { %1057 = vst [vmem:[%s434_s26] sm:$0xff] %v1055_v46 }
 0x430   : > { %v1046_v49 = vpop.permute.xlu1 %1045 }
 0x431   : > { %v1056_v50 = vsel %vm1054_vm4, %v1053_v48, %v1046_v49 }
 0x432   : > { %1058 = vst [vmem:[%s434_s26 + $0x8] sm:$0xff] %v1056_v50 }
 0x433   : > { %1546 = shalt.err (!%p1543_p9)
}
 0x434   : > { %s1547_s5 = scalar_lea.hbm %s1921_s29, 256  ;;  %s1551_s15 = scalar_lea.hbm %s1974_s9, 512 }
 0x435   : > { %p1548_p1 = scmp.ne.s32.totalorder %s1921_s29, %s1547_s5  ;;  %p1552_p8 = scmp.lt.s32.totalorder %s1921_s29, %s1974_s9 }
 0x436   : > { %p1553_p5 = scmp.lt.s32.totalorder %s1551_s15, %s1547_s5 }
 0x437   : > { %p1549_p4 = pnand %p1548_p1, %p2003_p7 }
 0x438   : > { %p1554_p2 = por %p1553_p5, %p1552_p8 }
 0x439   : > { %p1550_p6 = pneg %p1549_p4 }
 0x43b   : > { %p1555_p12 = pnand %p1554_p2, %p1550_p6 }
 0x43d   : > { %1558 = shalt.err (!%p1555_p12)
}
 0x43e   : > { %s1620_s12 = smov 128   ;;  %s1621_s21 = smov 8  }
 0x43f   : > { %1340 = dma.vmem_to_hbm [thread:$0]  (%p2003_p7), %s1913_s19, 256, %s1921_s29, %s1061_s17, %s1620_s12, %s1620_s12, %s1621_s21  }
 0x440 PF: > { %s1107_s25 = sand.u32 1, %s1593_s13   ;;  %p2006_p13 = scmp.ne.s32.totalorder %s1989_s20, 0 }
 0x441   : > { %p2007_p0 = scmp.ge.s32.totalorder %s1605_s16, 2  ;;  %s1108_s11 = scalar_lea.sflag [#allocation4], %s1107_s25 }
 0x443   : > { %p1356_p10 = pnand %p2007_p0, %p2006_p13 }
 0x445   : > { %p1357_p3 = pneg %p1356_p10 }
 0x447   : > { %1584 = dma.done.wait (%p1357_p3), %s1108_s11, 256  }
 0x448   : > { %1586 = vsyncadd (%p1357_p3), %s1108_s11, 4294967040  ;;  %s1117_s22 = scalar_lea.sflag [#allocation10], %s1107_s25 }
 0x449   : > { %1588 = dma.done.wait (%p1357_p3), %s1117_s22, 128  }
 0x44a   : > { %1590 = vsyncadd (%p1357_p3), %s1117_s22, 4294967168  ;;  %s2008_s27 = sld [smem:[#allocation15_spill]]  ;;  %p28_p7 = scmp.ge.s32.totalorder %s1755_s23, 4  }
 0x44b   : > { %s2009_s15 = sld [smem:[#allocation16_spill]]  ;;  %s2010_s13 = smov %s1597_s14 }
 0x44c   : > { %s2012_s16 = smov %s1755_s23  ;;  %30 = sbr.rel (!%p28_p7) target bundleno = 11 (0xb), region = 132 }
 0x450   : > { %s2011_s14 = smov %s2008_s27 }
 0x451   :  { %1122 = vsyncpa [#allocation3], 1 }
 0x452   :  { %1124 = vsyncpa [#allocation3 + $0x1], 1 }
 0x453   :  { %1125 = vsyncpa [#allocation6], 1 }
 0x454   :  { %1126 = vsyncpa [#allocation4], 1 }
 0x455   :  { %1128 = vsyncpa [#allocation4 + $0x1], 1 }
 0x456   :  { %1129 = vsyncpa [#allocation10], 1 }
 0x457   :  { %1131 = vsyncpa [#allocation10 + $0x1], 1 }

</bundles_post_ra>
